<compile_context>
chip_gen: v6e
topology: v6e:2x2x1
jax: 0.10.0
libtpu: 0.0.40
codegen_flags: <defaults>
</compile_context>

<pallas_src>
import jax
import jax.numpy as jnp
from jax.experimental import pallas as pl
from jax.experimental.pallas import tpu as pltpu


def _ceil_to(a: int, b: int) -> int:
    return -(-a // b) * b


def _pad_to(a, shape):
    pads = [(0, s - d) for d, s in zip(a.shape, shape)]
    return jnp.pad(a, pads)


def rgin_kernel(a_ref, h_ref, x_ref, loopw_ref, hbias_ref,
                w1_ref, b1_ref, w2_ref, b2_ref, out_ref, acc_ref):
    """grid = (row_tiles [parallel], num_bases [arbitrary], k_tiles [arbitrary])."""
    b = pl.program_id(1)
    k = pl.program_id(2)
    nb = pl.num_programs(1)
    nk = pl.num_programs(2)

    # First reduction step for this row tile: init accumulator with
    # self-loop projection + bias.
    @pl.when(jnp.logical_and(b == 0, k == 0))
    def _():
        acc_ref[...] = (
            jnp.dot(x_ref[...], loopw_ref[...],
                    preferred_element_type=jnp.float32)
            + hbias_ref[...]
        )

    # Message passing: acc += A_tilde_b[row_tile, k_tile] @ H_b[k_tile, :]
    acc_ref[...] += jnp.dot(a_ref[0], h_ref[0],
                            preferred_element_type=jnp.float32)

    # Last reduction step: fused MLP head (Linear->ReLU->Linear->ReLU).
    # Dropout (p=0.0) is identity.
    @pl.when(jnp.logical_and(b == nb - 1, k == nk - 1))
    def _():
        h = acc_ref[...]
        h = jnp.maximum(
            jnp.dot(h, w1_ref[...], preferred_element_type=jnp.float32)
            + b1_ref[...], 0.0)
        h = jnp.maximum(
            jnp.dot(h, w2_ref[...], preferred_element_type=jnp.float32)
            + b2_ref[...], 0.0)
        out_ref[...] = h.astype(out_ref.dtype)


def rgin_forward(adj, x, weight, w_comp, loop_weight, h_bias, w1, b1, w2, b2):
    num_rels, N, _ = adj.shape
    num_bases, in_feat, out_feat = weight.shape
    assert num_rels >= 1 and num_bases >= 1, "need at least one relation/basis"

    # ---- basis-decomposition precompute (glue, amortizable across layers) ----
    # A_tilde_b = sum_r w_comp[r,b] * A_r        (num_bases, N, N)
    # H_b       = x @ weight_b                   (num_bases, N, out_feat)
    a_tilde = jnp.einsum('rb,rvu->bvu', w_comp, adj)
    h_basis = jnp.einsum('vf,bfo->bvo', x, weight)

    # ---- padding / tiling ----
    of_pad = _ceil_to(out_feat, 128)              # lane-dense output & matmul N-dims
    n128 = _ceil_to(N, 128)
    if n128 >= 512:
        tm, tk = 256, 512
    elif n128 >= 256:
        tm, tk = 256, 256
    else:
        tm, tk = 128, 128
    n_pad = _ceil_to(N, max(tm, tk))

    a_p = _pad_to(a_tilde, (num_bases, n_pad, n_pad)).astype(jnp.float32)
    h_p = _pad_to(h_basis, (num_bases, n_pad, of_pad)).astype(jnp.float32)
    x_p = _pad_to(x, (n_pad, in_feat)).astype(jnp.float32)
    lw_p = _pad_to(loop_weight, (in_feat, of_pad)).astype(jnp.float32)
    hb_p = _pad_to(h_bias, (1, of_pad)).astype(jnp.float32)
    w1_p = _pad_to(w1, (of_pad, of_pad)).astype(jnp.float32)
    b1_p = _pad_to(b1, (1, of_pad)).astype(jnp.float32)
    w2_p = _pad_to(w2, (of_pad, of_pad)).astype(jnp.float32)
    b2_p = _pad_to(b2, (1, of_pad)).astype(jnp.float32)

    grid = (n_pad // tm, num_bases, n_pad // tk)

    # ---- VMEM budget (double-buffered inputs/outputs + resident params/scratch) ----
    bpe = 4
    a_blk = tm * tk * bpe
    h_blk = tk * of_pad * bpe
    x_blk = tm * in_feat * bpe
    out_blk = tm * of_pad * bpe
    params = (in_feat * of_pad + 2 * of_pad * of_pad + 3 * of_pad) * bpe
    scratch = tm * of_pad * bpe
    needed = 2 * (a_blk + h_blk + x_blk + out_blk + params) + scratch
    vmem_limit = int(min(max(needed * 3 // 2, 8 << 20), 64 << 20))

    # ---- cost hint for XLA scheduling around the custom call ----
    flops = (2 * num_bases * n_pad * n_pad * of_pad        # A_tilde @ H
             + 2 * n_pad * in_feat * of_pad                # self-loop
             + 4 * n_pad * of_pad * of_pad)                # 2-layer MLP
    bytes_accessed = bpe * (num_bases * n_pad * n_pad
                            + num_bases * n_pad * of_pad
                            + n_pad * in_feat
                            + in_feat * of_pad
                            + 2 * of_pad * of_pad + 3 * of_pad
                            + n_pad * of_pad)
    cost = pl.CostEstimate(flops=int(flops), transcendentals=0,
                           bytes_accessed=int(bytes_accessed))

    out_padded = pl.pallas_call(
        rgin_kernel,
        out_shape=jax.ShapeDtypeStruct((n_pad, of_pad), x.dtype),
        grid_spec=pltpu.PrefetchScalarGridSpec(
            num_scalar_prefetch=0,
            grid=grid,
            in_specs=[
                # A_tilde: (num_bases, N_pad, N_pad) -> (1, TM, TK)
                pl.BlockSpec((1, tm, tk), lambda i, b, k: (b, i, k)),
                # H: (num_bases, N_pad, OF_pad) -> (1, TK, OF_pad)
                pl.BlockSpec((1, tk, of_pad), lambda i, b, k: (b, k, 0)),
                # x row tile (for the self-loop matmul at init)
                pl.BlockSpec((tm, in_feat), lambda i, b, k: (i, 0)),
                # resident parameters
                pl.BlockSpec((in_feat, of_pad), lambda i, b, k: (0, 0)),
                pl.BlockSpec((1, of_pad), lambda i, b, k: (0, 0)),
                pl.BlockSpec((of_pad, of_pad), lambda i, b, k: (0, 0)),
                pl.BlockSpec((1, of_pad), lambda i, b, k: (0, 0)),
                pl.BlockSpec((of_pad, of_pad), lambda i, b, k: (0, 0)),
                pl.BlockSpec((1, of_pad), lambda i, b, k: (0, 0)),
            ],
            out_specs=pl.BlockSpec((tm, of_pad), lambda i, b, k: (i, 0)),
            scratch_shapes=[pltpu.VMEM((tm, of_pad), jnp.float32)],
        ),
        compiler_params=pltpu.CompilerParams(
            dimension_semantics=("parallel", "arbitrary", "arbitrary"),
            vmem_limit_bytes=vmem_limit,
        ),
        cost_estimate=cost,
    )(a_p, h_p, x_p, lw_p, hb_p, w1_p, b1_p, w2_p, b2_p)

    return out_padded[:N, :out_feat]


def rgin_reference(adj, x, weight, w_comp, loop_weight, h_bias, w1, b1, w2, b2):
    """Pure-JAX reference matching DGL RelGraphConv('basis') + MLP."""
    w_rel = jnp.einsum('rb,bio->rio', w_comp, weight)
    msgs = jnp.einsum('rvu,uf->rvf', adj, x)          # aggregate neighbor feats per rel
    h = jnp.einsum('rvf,rfo->vo', msgs, w_rel)        # apply relation weights
    h = h + x @ loop_weight + h_bias                  # self-loop + bias
    h = jnp.maximum(h @ w1 + b1, 0.0)
    h = jnp.maximum(h @ w2 + b2, 0.0)
    return h


if __name__ == "__main__":
    # Small deterministic setup
    N = 16            # num nodes
    E = 40            # num edges
    in_feat = 16
    out_feat = 32
    num_rels = 4
    num_bases = 2
    std = 1.0 / (out_feat ** 0.5)

    key = jax.random.PRNGKey(0)
    ks = jax.random.split(key, 10)

    # graph: edge list + edge types -> dense per-relation adjacency (dst, src)
    src = jax.random.randint(ks[0], (E,), 0, N)
    dst = jax.random.randint(ks[1], (E,), 0, N)
    etypes = jax.random.randint(ks[2], (E,), 0, num_rels)
    adj = jnp.zeros((num_rels, N, N), jnp.float32).at[etypes, dst, src].add(1.0)

    # node features
    x = jax.random.normal(ks[3], (N, in_feat), jnp.float32)

    # RelGraphConv params (basis regularizer), init ~ N(0, 1/sqrt(out_feat)), bias zeros
    weight = std * jax.random.normal(ks[4], (num_bases, in_feat, out_feat), jnp.float32)
    w_comp = std * jax.random.normal(ks[5], (num_rels, num_bases), jnp.float32)
    loop_weight = std * jax.random.normal(ks[6], (in_feat, out_feat), jnp.float32)
    h_bias = jnp.zeros((1, out_feat), jnp.float32)

    # MLP params (Linear weights used as x @ W; iid normal init, zero bias)
    w1 = std * jax.random.normal(ks[7], (out_feat, out_feat), jnp.float32)
    b1 = jnp.zeros((1, out_feat), jnp.float32)
    w2 = std * jax.random.normal(ks[8], (out_feat, out_feat), jnp.float32)
    b2 = jnp.zeros((1, out_feat), jnp.float32)

    # TODO(synk): nn.Dropout is identity here (p=0.0 / eval); training-mode dropout not modeled.

    out = rgin_forward(adj, x, weight, w_comp, loop_weight, h_bias, w1, b1, w2, b2)
    out = jax.block_until_ready(out)

    ref = rgin_reference(adj, x, weight, w_comp, loop_weight, h_bias, w1, b1, w2, b2)
    assert out.shape == (N, out_feat)
    assert jnp.allclose(out, ref, atol=1e-4, rtol=1e-4), "mismatch vs reference"

    print("KERNEL_OK")
</pallas_src>

<mosaic_0001>
module attributes {stable_mosaic.version = 11 : i64} {
  func.func @rgin_kernel(%arg0: i32, %arg1: i32, %arg2: i32, %arg3: memref<1x128x128xf32, #tpu.memory_space<vmem>>, %arg4: memref<1x128x128xf32, #tpu.memory_space<vmem>>, %arg5: memref<128x16xf32, #tpu.memory_space<vmem>>, %arg6: memref<16x128xf32, #tpu.memory_space<vmem>>, %arg7: memref<1x128xf32, #tpu.memory_space<vmem>>, %arg8: memref<128x128xf32, #tpu.memory_space<vmem>>, %arg9: memref<1x128xf32, #tpu.memory_space<vmem>>, %arg10: memref<128x128xf32, #tpu.memory_space<vmem>>, %arg11: memref<1x128xf32, #tpu.memory_space<vmem>>, %arg12: memref<128x128xf32, #tpu.memory_space<vmem>>, %arg13: memref<128x128xf32, #tpu.memory_space<vmem>>) attributes {dimension_semantics = [#tpu.dimension_semantics<parallel>, #tpu.dimension_semantics<arbitrary>, #tpu.dimension_semantics<arbitrary>], iteration_bounds = array<i64: 1, 2, 1>, scalar_prefetch = 0 : i64, scratch_operands = 1 : i64, tpu.core_type = #tpu.core_type<tc>, window_params = [{transform_indices = @transform_0, window_bounds = array<i64: 1, 128, 128>}, {transform_indices = @transform_1, window_bounds = array<i64: 1, 128, 128>}, {transform_indices = @transform_2, window_bounds = array<i64: 128, 16>}, {pipeline_mode = #tpu.pipeline_mode<synchronous>, transform_indices = @transform_3, window_bounds = array<i64: 16, 128>}, {pipeline_mode = #tpu.pipeline_mode<synchronous>, transform_indices = @transform_4, window_bounds = array<i64: 1, 128>}, {pipeline_mode = #tpu.pipeline_mode<synchronous>, transform_indices = @transform_5, window_bounds = array<i64: 128, 128>}, {pipeline_mode = #tpu.pipeline_mode<synchronous>, transform_indices = @transform_6, window_bounds = array<i64: 1, 128>}, {pipeline_mode = #tpu.pipeline_mode<synchronous>, transform_indices = @transform_7, window_bounds = array<i64: 128, 128>}, {pipeline_mode = #tpu.pipeline_mode<synchronous>, transform_indices = @transform_8, window_bounds = array<i64: 1, 128>}, {transform_indices = @transform_9, window_bounds = array<i64: 128, 128>}]} {
    %c0_i32 = arith.constant 0 : i32
    %0 = arith.cmpi eq, %arg1, %c0_i32 : i32
    %c0_i32_0 = arith.constant 0 : i32
    %1 = arith.cmpi eq, %arg2, %c0_i32_0 : i32
    %2 = arith.andi %0, %1 : i1
    %3 = arith.extui %2 : i1 to i32
    %c0_i32_1 = arith.constant 0 : i32
    %4 = arith.cmpi ne, %3, %c0_i32_1 : i32
    scf.if %4 {
      %c0_13 = arith.constant 0 : index
      %c0_14 = arith.constant 0 : index
      %18 = vector.load %arg5[%c0_13, %c0_14] : memref<128x16xf32, #tpu.memory_space<vmem>>, vector<128x16xf32>
      %c0_15 = arith.constant 0 : index
      %c0_16 = arith.constant 0 : index
      %19 = vector.load %arg6[%c0_15, %c0_16] : memref<16x128xf32, #tpu.memory_space<vmem>>, vector<16x128xf32>
      %cst_17 = arith.constant dense<0.000000e+00> : vector<128x128xf32>
      %20 = tpu.matmul %18, %19, %cst_17 {dimension_numbers = #tpu.dot_dimension_numbers<[1], [0], [0], [1], [0, 0, 1, 1], [], []>} : vector<128x16xf32>, vector<16x128xf32>, vector<128x128xf32> -> vector<128x128xf32>
      %c0_18 = arith.constant 0 : index
      %c0_19 = arith.constant 0 : index
      %21 = vector.load %arg7[%c0_18, %c0_19] : memref<1x128xf32, #tpu.memory_space<vmem>>, vector<1x128xf32>
      %22 = vector.broadcast %21 : vector<1x128xf32> to vector<128x128xf32>
      %23 = arith.addf %20, %22 : vector<128x128xf32>
      %c0_20 = arith.constant 0 : index
      %c0_21 = arith.constant 0 : index
      %24 = vector.load %arg13[%c0_20, %c0_21] : memref<128x128xf32, #tpu.memory_space<vmem>>, vector<128x128xf32>
      tpu.vector_store %arg13[%c0_20, %c0_21], %23 {strides = array<i32>} : memref<128x128xf32, #tpu.memory_space<vmem>>, vector<128x128xf32>,
    } else {
    }
    %c0 = arith.constant 0 : index
    %c0_2 = arith.constant 0 : index
    %5 = vector.load %arg13[%c0, %c0_2] : memref<128x128xf32, #tpu.memory_space<vmem>>, vector<128x128xf32>
    %c0_3 = arith.constant 0 : index
    %c0_4 = arith.constant 0 : index
    %c0_5 = arith.constant 0 : index
    %6 = vector.load %arg3[%c0_3, %c0_4, %c0_5] : memref<1x128x128xf32, #tpu.memory_space<vmem>>, vector<1x128x128xf32>
    %7 = vector.shape_cast %6 : vector<1x128x128xf32> to vector<128x128xf32>
    %c0_6 = arith.constant 0 : index
    %c0_7 = arith.constant 0 : index
    %c0_8 = arith.constant 0 : index
    %8 = vector.load %arg4[%c0_6, %c0_7, %c0_8] : memref<1x128x128xf32, #tpu.memory_space<vmem>>, vector<1x128x128xf32>
    %9 = vector.shape_cast %8 : vector<1x128x128xf32> to vector<128x128xf32>
    %cst = arith.constant dense<0.000000e+00> : vector<128x128xf32>
    %10 = tpu.matmul %7, %9, %cst {dimension_numbers = #tpu.dot_dimension_numbers<[1], [0], [0], [1], [0, 0, 1, 1], [], []>} : vector<128x128xf32>, vector<128x128xf32>, vector<128x128xf32> -> vector<128x128xf32>
    %11 = arith.addf %5, %10 : vector<128x128xf32>
    %c0_9 = arith.constant 0 : index
    %c0_10 = arith.constant 0 : index
    %12 = vector.load %arg13[%c0_9, %c0_10] : memref<128x128xf32, #tpu.memory_space<vmem>>, vector<128x128xf32>
    tpu.vector_store %arg13[%c0_9, %c0_10], %11 {strides = array<i32>} : memref<128x128xf32, #tpu.memory_space<vmem>>, vector<128x128xf32>,
    %c1_i32 = arith.constant 1 : i32
    %13 = arith.cmpi eq, %arg1, %c1_i32 : i32
    %c0_i32_11 = arith.constant 0 : i32
    %14 = arith.cmpi eq, %arg2, %c0_i32_11 : i32
    %15 = arith.andi %13, %14 : i1
    %16 = arith.extui %15 : i1 to i32
    %c0_i32_12 = arith.constant 0 : i32
    %17 = arith.cmpi ne, %16, %c0_i32_12 : i32
    scf.if %17 {
      %c0_13 = arith.constant 0 : index
      %c0_14 = arith.constant 0 : index
      %18 = vector.load %arg13[%c0_13, %c0_14] : memref<128x128xf32, #tpu.memory_space<vmem>>, vector<128x128xf32>
      %c0_15 = arith.constant 0 : index
      %c0_16 = arith.constant 0 : index
      %19 = vector.load %arg8[%c0_15, %c0_16] : memref<128x128xf32, #tpu.memory_space<vmem>>, vector<128x128xf32>
      %cst_17 = arith.constant dense<0.000000e+00> : vector<128x128xf32>
      %20 = tpu.matmul %18, %19, %cst_17 {dimension_numbers = #tpu.dot_dimension_numbers<[1], [0], [0], [1], [0, 0, 1, 1], [], []>} : vector<128x128xf32>, vector<128x128xf32>, vector<128x128xf32> -> vector<128x128xf32>
      %c0_18 = arith.constant 0 : index
      %c0_19 = arith.constant 0 : index
      %21 = vector.load %arg9[%c0_18, %c0_19] : memref<1x128xf32, #tpu.memory_space<vmem>>, vector<1x128xf32>
      %22 = vector.broadcast %21 : vector<1x128xf32> to vector<128x128xf32>
      %23 = arith.addf %20, %22 : vector<128x128xf32>
      %cst_20 = arith.constant 0.000000e+00 : f32
      %24 = vector.broadcast %cst_20 : f32 to vector<128x128xf32>
      %25 = arith.maximumf %23, %24 : vector<128x128xf32>
      %c0_21 = arith.constant 0 : index
      %c0_22 = arith.constant 0 : index
      %26 = vector.load %arg10[%c0_21, %c0_22] : memref<128x128xf32, #tpu.memory_space<vmem>>, vector<128x128xf32>
      %cst_23 = arith.constant dense<0.000000e+00> : vector<128x128xf32>
      %27 = tpu.matmul %25, %26, %cst_23 {dimension_numbers = #tpu.dot_dimension_numbers<[1], [0], [0], [1], [0, 0, 1, 1], [], []>} : vector<128x128xf32>, vector<128x128xf32>, vector<128x128xf32> -> vector<128x128xf32>
      %c0_24 = arith.constant 0 : index
      %c0_25 = arith.constant 0 : index
      %28 = vector.load %arg11[%c0_24, %c0_25] : memref<1x128xf32, #tpu.memory_space<vmem>>, vector<1x128xf32>
      %29 = vector.broadcast %28 : vector<1x128xf32> to vector<128x128xf32>
      %30 = arith.addf %27, %29 : vector<128x128xf32>
      %cst_26 = arith.constant 0.000000e+00 : f32
      %31 = vector.broadcast %cst_26 : f32 to vector<128x128xf32>
      %32 = arith.maximumf %30, %31 : vector<128x128xf32>
      %c0_27 = arith.constant 0 : index
      %c0_28 = arith.constant 0 : index
      %33 = vector.load %arg12[%c0_27, %c0_28] : memref<128x128xf32, #tpu.memory_space<vmem>>, vector<128x128xf32>
      tpu.vector_store %arg12[%c0_27, %c0_28], %32 {strides = array<i32>} : memref<128x128xf32, #tpu.memory_space<vmem>>, vector<128x128xf32>,
    } else {
    }
    return
  }
  func.func @transform_0(%arg0: i32, %arg1: i32, %arg2: i32) -> (i32, i32, i32) {
    %c0_i32 = arith.constant 0 : i32
    return %arg1, %arg0, %arg2 : i32, i32, i32
  }
  func.func @transform_1(%arg0: i32, %arg1: i32, %arg2: i32) -> (i32, i32, i32) {
    %c0_i32 = arith.constant 0 : i32
    %c0_i32_0 = arith.constant 0 : i32
    return %arg1, %arg2, %c0_i32 : i32, i32, i32
  }
  func.func @transform_2(%arg0: i32, %arg1: i32, %arg2: i32) -> (i32, i32) {
    %c0_i32 = arith.constant 0 : i32
    %c0_i32_0 = arith.constant 0 : i32
    return %arg0, %c0_i32 : i32, i32
  }
  func.func @transform_3(%arg0: i32, %arg1: i32, %arg2: i32) -> (i32, i32) {
    %c0_i32 = arith.constant 0 : i32
    %c0_i32_0 = arith.constant 0 : i32
    %c0_i32_1 = arith.constant 0 : i32
    return %c0_i32, %c0_i32_0 : i32, i32
  }
  func.func @transform_4(%arg0: i32, %arg1: i32, %arg2: i32) -> (i32, i32) {
    %c0_i32 = arith.constant 0 : i32
    %c0_i32_0 = arith.constant 0 : i32
    %c0_i32_1 = arith.constant 0 : i32
    return %c0_i32, %c0_i32_0 : i32, i32
  }
  func.func @transform_5(%arg0: i32, %arg1: i32, %arg2: i32) -> (i32, i32) {
    %c0_i32 = arith.constant 0 : i32
    %c0_i32_0 = arith.constant 0 : i32
    %c0_i32_1 = arith.constant 0 : i32
    return %c0_i32, %c0_i32_0 : i32, i32
  }
  func.func @transform_6(%arg0: i32, %arg1: i32, %arg2: i32) -> (i32, i32) {
    %c0_i32 = arith.constant 0 : i32
    %c0_i32_0 = arith.constant 0 : i32
    %c0_i32_1 = arith.constant 0 : i32
    return %c0_i32, %c0_i32_0 : i32, i32
  }
  func.func @transform_7(%arg0: i32, %arg1: i32, %arg2: i32) -> (i32, i32) {
    %c0_i32 = arith.constant 0 : i32
    %c0_i32_0 = arith.constant 0 : i32
    %c0_i32_1 = arith.constant 0 : i32
    return %c0_i32, %c0_i32_0 : i32, i32
  }
  func.func @transform_8(%arg0: i32, %arg1: i32, %arg2: i32) -> (i32, i32) {
    %c0_i32 = arith.constant 0 : i32
    %c0_i32_0 = arith.constant 0 : i32
    %c0_i32_1 = arith.constant 0 : i32
    return %c0_i32, %c0_i32_0 : i32, i32
  }
  func.func @transform_9(%arg0: i32, %arg1: i32, %arg2: i32) -> (i32, i32) {
    %c0_i32 = arith.constant 0 : i32
    %c0_i32_0 = arith.constant 0 : i32
    return %arg0, %c0_i32 : i32, i32
  }
}

</mosaic_0001>

<bundles_post_ra>
// kernel: tpu_custom_call.1
= control target key start
LH: loop header
LB: loop body
LE: loop exit
PB: predicated region body
PF: predicated region fallthrough
CT: control target
= control target key end

     0   :  { %s2481_s0 = inlined_call_operand.hbm [shape: f32[2,128,128], index: 0, kind: input, shape index: {}]   ;;  %s2482_s1 = inlined_call_operand.hbm [shape: f32[2,128,128], index: 1, kind: input, shape index: {}]   ;;  %s2483_s2 = inlined_call_operand.vmem [shape: f32[128,16], index: 2, kind: input, shape index: {}]   ;;  %s2484_s3 = inlined_call_operand.vmem [shape: f32[16,128], index: 3, kind: input, shape index: {}]   ;;  %s2485_s4 = inlined_call_operand.vmem [shape: f32[1,128], index: 4, kind: input, shape index: {}]   ;;  %s2486_s5 = inlined_call_operand.vmem [shape: f32[128,128], index: 5, kind: input, shape index: {}]   ;;  %s2487_s6 = inlined_call_operand.vmem [shape: f32[1,128], index: 6, kind: input, shape index: {}]   ;;  %s2488_s7 = inlined_call_operand.hbm [shape: f32[128,128], index: 7, kind: input, shape index: {}]   ;;  %s2489_s8 = inlined_call_operand.vmem [shape: f32[1,128], index: 8, kind: input, shape index: {}]   ;;  %s2490_s9 = inlined_call_operand.hbm [shape: f32[128,128], index: 9, kind: output, shape index: {}]  }
   0x1   :  { %2497 = sst [smem:[#allocation16_spill]] %s2481_s0 }
   0x2   :  { %2498 = sst [smem:[#allocation17_spill]] %s2482_s1 }
   0x3   :  { %2499 = sst [smem:[#allocation18_spill]] %s2488_s7 }
   0x4   :  { %14 = vsyncpa [#allocation4], 0 }
   0x5   :  { %16 = vsyncpa [#allocation4 + $0x1], 0 }
   0x6   :  { %17 = vsyncpa [#allocation7], 0 }
   0x7   :  { %19 = vsyncpa [#allocation7 + $0x1], 0 }
   0x8   :  { %20 = vsyncpa [#allocation5], 0  ;;  %s2154_s30 = smov 0   ;;  %s2156_s10 = smov 0  }
   0x9   :  { %s2158_s11 = smov 0   ;;  %s2160_s12 = smov 0  }
   0xa   :  { %s2162_s13 = smov 0   ;;  %s2164_s14 = smov 0  }
   0xb LB: > { %2500 = sst [smem:[#allocation14_spill]] %s2090_s13  ;;  %s2183_s15 = sadd.s32 4294967295, %s2094_s14   ;;  %s2094_s14 = sphi %s2164_s14, %s26_s14   ;;  %s2090_s13 = sphi %s2162_s13, %s2512_s13   ;;  %s2086_s12 = sphi %s2160_s12, %s2511_s12   ;;  %s2082_s11 = sphi %s2158_s11, %s2515_s11   ;;  %s2078_s10 = sphi %s2156_s10, %s2514_s10   ;;  %s2074_s30 = sphi %s2154_s30, %s2513_s30  }
   0xc   : > { %p69_p0 = scmp.ne.s32.totalorder %s2078_s10, %s2074_s30  ;;  %p70_p1 = scmp.eq.s32.totalorder %s2183_s15, 0 }
   0xd   : > { %p1455_p2 = scmp.ge.s32.totalorder %s2094_s14, 1  ;;  %p286_p3 = scmp.lt.s32.totalorder %s2094_s14, 3 }
   0xe   : > { %p2191_p4 = por %p70_p1, %p69_p0  ;;  %s2096_s18 = smov [#allocation8]  }
   0xf   : > { %p2195_p5 = pnand %p1455_p2, %p286_p3  ;;  %s319_s19 = sshll.u32 %s2096_s18, 4  ;;  %s320_s19 = int_to_ptr.vmem [resolvable:$true] %s319_s19 }
  0x10   : > { %s41_s21 = sadd.s32 1, %s2090_s13  ;;  %s1937_s22 = scalar_lea.vmem %s320_s19, 2048 }
  0x11   : > { %p1856_p6 = pneg %p2195_p5  ;;  %p1938_p9 = scmp.ne.s32.totalorder %s320_s19, %s1937_s22 }
  0x12   : > { %p1945_p12 = scmp.lt.s32.totalorder %s320_s19, %s320_s19  ;;  %p1946_p13 = scmp.lt.s32.totalorder %s1937_s22, %s1937_s22 }
  0x13   : > { %p2203_p7 = pnand %p1856_p6, %p70_p1 }
  0x14   : > { %p1947_p0 = por %p1946_p13, %p1945_p12 }
  0x15   : > { %p1928_p8 = pneg %p2203_p7 }
  0x17   : > { %p1940_p10 = pnand %p1938_p9, %p1928_p8 }
  0x19   : > { %p1941_p11 = pneg %p1940_p10 }
  0x1b   : > { %p1948_p2 = pnand %p1947_p0, %p1941_p11 }
  0x1d   : > { %1951 = shalt.err (!%p1948_p2)
}
  0x1e   : > { %s2491_s23 = smov 128   ;;  %s2493_s24 = smov 8  }
  0x1f   : > { %s2504_s7 = sld [smem:[#allocation18_spill]]  ;;  %p43_p3 = scmp.ge.s32.totalorder %s41_s21, 2 }
  0x20   : > { %s56_s27 = sadd.s32 1, %s2082_s11  ;;  %p63_p6 = scmp.ne.s32.totalorder %s2082_s11, %s2078_s10 }
  0x21   : > { %p64_p8 = scmp.eq.s32.totalorder %s2094_s14, 0  ;;  %s2517_s21 = smov (%p43_p3, %s41_s21), 0 }
  0x22   : > { %2505 = sst [smem:[#allocation15_spill]] %s2517_s21  ;;  %p1868_p10 = scmp.lt.s32.totalorder %s2094_s14, 2 }
  0x23   : > { %p65_p9 = por %p64_p8, %p63_p6  ;;  %s49_s28 = ssub.s32 %s2090_s13, %s2517_s21 }
  0x24   : > { %s336_s29 = sand.u32 1, %s2082_s11   ;;  %p54_p11 = scmp.eq.s32.totalorder %s49_s28, 0 }
  0x25   : > { %1859 = dma.hbm_to_vmem [thread:$0]  (!%p2203_p7), %s2504_s7, 2048, %s320_s19, [#allocation7], %s2491_s23, %s2491_s23, %s2493_s24  }
  0x26   : > { %s2228_s30 = sshll.u32 %s336_s29, 7  ;;  %s1494_s18 = sshll.u32 %s2090_s13, 11 }
  0x27   : > { %s2232_s20 = scalar_select %p54_p11, %s2082_s11, %s56_s27  }
  0x28   : > { %s2506_s0 = sld [smem:[#allocation16_spill]]  ;;  %s340_s26 = scalar_lea.vmem [#allocation3], %s2228_s30 }
  0x29   : > { %s350_s23 = sshll.u32 %s340_s26, 4  ;;  %p2238_p7 = pnand %p1868_p10, %p65_p9  ;;  %s351_s23 = int_to_ptr.vmem [resolvable:$true] %s350_s23 }
  0x2a   : > { %s2508_s1 = sld [smem:[#allocation17_spill]]  ;;  %s337_s27 = scalar_lea.sflag [#allocation4], %s336_s29 }
  0x2b   : > { %p1954_p12 = pneg %p2238_p7  ;;  %s1965_s13 = scalar_lea.vmem %s351_s23, 2048 }
  0x2c   : > { %p1966_p13 = scmp.ne.s32.totalorder %s351_s23, %s1965_s13  ;;  %s2099_s22 = smov [#allocation3]  }
  0x2d   : > { %s1970_s19 = sshll.u32 %s2099_s22, 4  ;;  %s1971_s19 = int_to_ptr.vmem [resolvable:$false] %s1970_s19 }
  0x2e   : > { %s349_s25 = scalar_lea.hbm %s2506_s0, %s1494_s18  ;;  %p1968_p0 = pnand %p1966_p13, %p1954_p12 }
  0x2f   : > { %s1972_s26 = scalar_lea.vmem %s1971_s19, 4096  ;;  %p1973_p3 = scmp.lt.s32.totalorder %s351_s23, %s1971_s19 }
  0x30   : > { %s2245_s21 = scalar_lea.hbm %s2508_s1, %s1494_s18  ;;  %p1969_p2 = pneg %p1968_p0 }
  0x31   : > { %p1974_p6 = scmp.lt.s32.totalorder %s1972_s26, %s1965_s13 }
  0x33   : > { %p1975_p8 = por %p1974_p6, %p1973_p3 }
  0x35   : > { %p1976_p9 = pnand %p1975_p8, %p1969_p2 }
  0x37   : > { %1979 = shalt.err (!%p1976_p9)
}
  0x38   : > { %s2509_s7 = smov 8   ;;  %s2510_s29 = smov 128  }
  0x39   : > { %1863 = dma.hbm_to_vmem [thread:$0]  (!%p2238_p7), %s349_s25, 2048, %s351_s23, %s337_s27, %s2510_s29, %s2510_s29, %s2509_s7  }
  0x3a   : > { %s364_s18 = scalar_lea.vmem [#allocation6], %s2228_s30  ;;  %s360_s0 = sand.u32 1, %s2094_s14  }
  0x3b   : > { %s373_s28 = sshll.u32 %s364_s18, 4  ;;  %s361_s22 = scalar_lea.sflag [#allocation7], %s360_s0  ;;  %s374_s28 = int_to_ptr.vmem [resolvable:$true] %s373_s28 }
  0x3c   : > { %s1993_s1 = scalar_lea.vmem %s374_s28, 2048  ;;  %s2100_s13 = smov [#allocation6]  }
  0x3d   : > { %p1994_p10 = scmp.ne.s32.totalorder %s374_s28, %s1993_s1  ;;  %s1998_s19 = sshll.u32 %s2100_s13, 4  ;;  %s1999_s19 = int_to_ptr.vmem [resolvable:$false] %s1998_s19 }
  0x3e   : > { %s2000_s26 = scalar_lea.vmem %s1999_s19, 4096  ;;  %p2001_p0 = scmp.lt.s32.totalorder %s374_s28, %s1999_s19 }
  0x3f   : > { %p1996_p11 = pnand %p1994_p10, %p1954_p12  ;;  %p2002_p2 = scmp.lt.s32.totalorder %s2000_s26, %s1993_s1 }
  0x41   : > { %p1997_p13 = pneg %p1996_p11  ;;  %p2003_p3 = por %p2002_p2, %p2001_p0 }
  0x43   : > { %p2004_p6 = pnand %p2003_p3, %p1997_p13 }
  0x45   : > { %2007 = shalt.err (!%p2004_p6)
}
  0x46   : > { %1866 = dma.hbm_to_vmem [thread:$0]  (!%p2238_p7), %s2245_s21, 2048, %s374_s28, %s361_s22, %s2510_s29, %s2510_s29, %s2509_s7  }
  0x47   : > { %385 = sbr.rel (%p2195_p5) target bundleno = 983 (0x3d7), region = 56  ;;  %s387_s0 = sand.u32 (!%p2195_p5), 1, %s2078_s10  }
  0x48   : > { %s1466_s23 = sshll.u32 (!%p2195_p5), %s387_s0, 7  ;;  %s388_s30 = scalar_lea.sflag (!%p2195_p5), [#allocation4], %s387_s0 }
  0x49   : > { %s2271_s25 = scalar_lea.vmem (!%p2195_p5), [#allocation3], %s1466_s23 }
  0x4c   : > { %2057 = dma.done.wait (%p2191_p4), %s388_s30, 2048  }
  0x4d   : > { %2059 = vsyncadd (%p2191_p4), %s388_s30, 4294965248  ;;  %s396_s1 = sand.u32 1, %s2183_s15   ;;  %s2278_s21 = scalar_lea.vmem [#allocation6], %s1466_s23 }
  0x4e   : > { %s397_s24 = scalar_lea.sflag [#allocation7], %s396_s1 }
  0x4f   : > { %2061 = dma.done.wait (%p2191_p4), %s397_s24, 2048  }
  0x50   : > { %2063 = vsyncadd (%p2191_p4), %s397_s24, 4294965248 }
  0x51   : > { %2065 = dma.done.wait (%p70_p1), [#allocation7], 2048  }
  0x52   : > { %2067 = vsyncadd (%p70_p1), [#allocation7], 4294965248  ;;  %p453_p5 = scmp.eq.s32.totalorder %s2086_s12, 0 }
  0x53   : > { %v476_v0 = vld [vmem:[%s2484_s3 + $0x8] sm:$0xff] (%p453_p5)  ;;  %v475_v1 = vld [vmem:[%s2484_s3] sm:$0xff] (%p453_p5)  ;;  %vm484_vm0 = vcmask (%p453_p5), 130048   ;;  %v461_v6 = vld [vmem:[%s2483_s2 + $0x10] sm:$0xff] (%p453_p5) }
  0x54   : > { %458 = sbr.rel (!%p453_p5) target bundleno = 299 (0x12b), region = 72  ;;  %1612 = vmatprep.subr.mxu0 (%p453_p5), %v476_v0  ;;  %1808 = vmatprep.subr.mxu1 (%p453_p5), %v476_v0  ;;  %v459_v2 = vld [vmem:[%s2483_s2] sm:$0xff] (%p453_p5)  ;;  %v460_v4 = vld [vmem:[%s2483_s2 + $0x8] sm:$0xff] (%p453_p5)  ;;  %v469_v7 = vld [vmem:[%s2483_s2 + $0x50] sm:$0xff] (%p453_p5) }
  0x55   : > { %1613 = vmatpush3.msra.mxu0 (%p453_p5), %v476_v0  ;;  %1810 = vmatpush3.msra.mxu1 (%p453_p5), %v476_v0  ;;  %v467_v3 = vld [vmem:[%s2483_s2 + $0x40] sm:$0xff] (%p453_p5)  ;;  %v468_v5 = vld [vmem:[%s2483_s2 + $0x48] sm:$0xff] (%p453_p5)  ;;  %v462_v8 = vld [vmem:[%s2483_s2 + $0x18] sm:$0xff] (%p453_p5) }
  0x56   : > { %1614 = vmatprep.subr.mxu0 (%p453_p5), %v475_v1  ;;  %1809 = vmatprep.subr.mxu1 (%p453_p5), %v475_v1  ;;  %v470_v9 = vld [vmem:[%s2483_s2 + $0x58] sm:$0xff] (%p453_p5)  ;;  %v463_v10 = vld [vmem:[%s2483_s2 + $0x20] sm:$0xff] (%p453_p5)  ;;  %v464_v12 = vld [vmem:[%s2483_s2 + $0x28] sm:$0xff] (%p453_p5) }
  0x57   : > { %1615 = vmatpush3.msra.mxu0 (%p453_p5), %v475_v1  ;;  %1811 = vmatpush3.msra.mxu1 (%p453_p5), %v475_v1  ;;  %v471_v11 = vld [vmem:[%s2483_s2 + $0x60] sm:$0xff] (%p453_p5)  ;;  %v472_v13 = vld [vmem:[%s2483_s2 + $0x68] sm:$0xff] (%p453_p5)  ;;  %v465_v14 = vld [vmem:[%s2483_s2 + $0x30] sm:$0xff] (%p453_p5) }
  0x58   : > { %1616 = vmatprep.mubr.msk.f32.mxu0 (%p453_p5), %vm484_vm0, %v459_v2  ;;  %1628 = vmatprep.mubr.msk.f32.mxu1 (%p453_p5), %vm484_vm0, %v467_v3  ;;  %v473_v15 = vld [vmem:[%s2483_s2 + $0x70] sm:$0xff] (%p453_p5)  ;;  %v466_v16 = vld [vmem:[%s2483_s2 + $0x38] sm:$0xff] (%p453_p5)  ;;  %v1470_v18 = vld [vmem:[%s2485_s4] ss:$0 sm:$0xff] (%p453_p5) }
  0x59   : > { %1617 = vmatmul.mubr.msk.f32.vlgmr.msra.gmra.mxu0 %vm484_vm0, %v460_v4  ;;  %1629 = vmatmul.mubr.msk.f32.vlgmr.msra.gmra.mxu1 %vm484_vm0, %v468_v5  ;;  %v474_v17 = vld [vmem:[%s2483_s2 + $0x78] sm:$0xff] }
  0x5a   : > { %1619 = vmatprep.mubr.msk.f32.mxu0 %vm484_vm0, %v461_v6  ;;  %1631 = vmatprep.mubr.msk.f32.mxu1 %vm484_vm0, %v469_v7 }
  0x5d   : > { %1620 = vmatmul.mubr.msk.f32.gmra.mxu0 %vm484_vm0, %v462_v8  ;;  %1632 = vmatmul.mubr.msk.f32.gmra.mxu1 %vm484_vm0, %v470_v9 }
  0x5e   : > { %1622 = vmatprep.mubr.msk.f32.mxu0 %vm484_vm0, %v463_v10  ;;  %1634 = vmatprep.mubr.msk.f32.mxu1 %vm484_vm0, %v471_v11 }
  0x61   : > { %1623 = vmatmul.mubr.msk.f32.gmra.mxu0 %vm484_vm0, %v464_v12  ;;  %1635 = vmatmul.mubr.msk.f32.gmra.mxu1 %vm484_vm0, %v472_v13 }
  0x62   : > { %1625 = vmatprep.mubr.msk.f32.mxu0 %vm484_vm0, %v465_v14  ;;  %1637 = vmatprep.mubr.msk.f32.mxu1 %vm484_vm0, %v473_v15 }
  0x65   : > { %1626 = vmatmul.mubr.msk.f32.gmra.mxu0 %vm484_vm0, %v466_v16  ;;  %1638 = vmatmul.mubr.msk.f32.gmra.mxu1 %vm484_vm0, %v474_v17 }
 0x119   : > { %v1618_v19 = vpop.f32.mrf.mxu0  ;;  %v1630_v20 = vpop.f32.mrf.mxu1 }
 0x11a   : > { %v605_v21 = vadd.f32 %v1618_v19, %v1470_v18  ;;  %v645_v22 = vadd.f32 %v1630_v20, %v1470_v18 }
 0x11b   : > { %v599_v23 = vpop.f32.mrf.mxu0  ;;  %v639_v24 = vpop.f32.mrf.mxu1 }
 0x11c   : > { %679 = vst [vmem:[#allocation2] sm:$0xff] %v605_v21  ;;  %687 = vst [vmem:[#allocation2 + $0x20] sm:$0xff] %v645_v22  ;;  %v600_v25 = vadd.f32 %v1470_v18, %v599_v23  ;;  %v640_v26 = vadd.f32 %v1470_v18, %v639_v24 }
 0x11d   : > { %v1621_v27 = vpop.f32.mrf.mxu0  ;;  %v1633_v28 = vpop.f32.mrf.mxu1 }
 0x11e   : > { %678 = vst [vmem:[#allocation2 + $0x30] sm:$0xff] %v600_v25  ;;  %686 = vst [vmem:[#allocation2 + $0x40] sm:$0xff] %v640_v26  ;;  %v615_v29 = vadd.f32 %v1621_v27, %v1470_v18  ;;  %v655_v30 = vadd.f32 %v1633_v28, %v1470_v18 }
 0x11f   : > { %v609_v31 = vpop.f32.mrf.mxu0  ;;  %v649_v32 = vpop.f32.mrf.mxu1 }
 0x120   : > { %681 = vst [vmem:[#allocation2 + $0x18] sm:$0xff] %v615_v29  ;;  %689 = vst [vmem:[#allocation2 + $0x38] sm:$0xff] %v655_v30  ;;  %v610_v33 = vadd.f32 %v1470_v18, %v609_v31  ;;  %v650_v34 = vadd.f32 %v1470_v18, %v649_v32 }
 0x121   : > { %v1624_v35 = vpop.f32.mrf.mxu0  ;;  %v1636_v36 = vpop.f32.mrf.mxu1 }
 0x122   : > { %680 = vst [vmem:[#allocation2 + $0x58] sm:$0xff] %v610_v33  ;;  %688 = vst [vmem:[#allocation2 + $0x10] sm:$0xff] %v650_v34  ;;  %v625_v37 = vadd.f32 %v1624_v35, %v1470_v18  ;;  %v665_v38 = vadd.f32 %v1636_v36, %v1470_v18 }
 0x123   : > { %v619_v39 = vpop.f32.mrf.mxu0  ;;  %v659_v40 = vpop.f32.mrf.mxu1 }
 0x124   : > { %683 = vst [vmem:[#allocation2 + $0x68] sm:$0xff] %v625_v37  ;;  %691 = vst [vmem:[#allocation2 + $0x70] sm:$0xff] %v665_v38  ;;  %v620_v41 = vadd.f32 %v1470_v18, %v619_v39  ;;  %v660_v42 = vadd.f32 %v1470_v18, %v659_v40 }
 0x125   : > { %v1627_v43 = vpop.f32.mrf.mxu0  ;;  %v1639_v44 = vpop.f32.mrf.mxu1 }
 0x126   : > { %682 = vst [vmem:[#allocation2 + $0x50] sm:$0xff] %v620_v41  ;;  %690 = vst [vmem:[#allocation2 + $0x60] sm:$0xff] %v660_v42  ;;  %v635_v45 = vadd.f32 %v1627_v43, %v1470_v18  ;;  %v675_v46 = vadd.f32 %v1639_v44, %v1470_v18 }
 0x127   : > { %v629_v47 = vpop.f32.mrf.mxu0  ;;  %v669_v48 = vpop.f32.mrf.mxu1 }
 0x128   : > { %685 = vst [vmem:[#allocation2 + $0x48] sm:$0xff] %v635_v45  ;;  %693 = vst [vmem:[#allocation2 + $0x28] sm:$0xff] %v675_v46  ;;  %v630_v49 = vadd.f32 %v1470_v18, %v629_v47  ;;  %v670_v50 = vadd.f32 %v1470_v18, %v669_v48 }
 0x12a   : > { %684 = vst [vmem:[#allocation2 + $0x8] sm:$0xff] %v630_v49  ;;  %692 = vst [vmem:[#allocation2 + $0x78] sm:$0xff] %v670_v50 }
 0x12b PF: > { %v741_v51 = vld [vmem:[%s2278_s21 + $0x78] sm:$0xff]  ;;  %v740_v52 = vld [vmem:[%s2278_s21 + $0x70] sm:$0xff]  ;;  %v739_v53 = vld [vmem:[%s2278_s21 + $0x68] sm:$0xff]  ;;  %p919_p1 = scmp.eq.s32.totalorder %s2086_s12, 1 }
 0x12c   : > { %1640 = vmatprep.subr.mxu0 %v741_v51  ;;  %1812 = vmatprep.subr.mxu1 %v741_v51  ;;  %v738_v54 = vld [vmem:[%s2278_s21 + $0x60] sm:$0xff]  ;;  %v737_v55 = vld [vmem:[%s2278_s21 + $0x58] sm:$0xff]  ;;  %v736_v56 = vld [vmem:[%s2278_s21 + $0x50] sm:$0xff] }
 0x12d   : > { %1641 = vmatpush3.msra.mxu0 %v741_v51  ;;  %1828 = vmatpush3.msra.mxu1 %v741_v51  ;;  %v735_v57 = vld [vmem:[%s2278_s21 + $0x48] sm:$0xff]  ;;  %v734_v58 = vld [vmem:[%s2278_s21 + $0x40] sm:$0xff]  ;;  %v733_v59 = vld [vmem:[%s2278_s21 + $0x38] sm:$0xff] }
 0x12e   : > { %1642 = vmatprep.subr.mxu0 %v740_v52  ;;  %1813 = vmatprep.subr.mxu1 %v740_v52  ;;  %v732_v60 = vld [vmem:[%s2278_s21 + $0x30] sm:$0xff]  ;;  %v731_v61 = vld [vmem:[%s2278_s21 + $0x28] sm:$0xff]  ;;  %v730_v62 = vld [vmem:[%s2278_s21 + $0x20] sm:$0xff] }
 0x12f   : > { %1643 = vmatpush3.msra.mxu0 %v740_v52  ;;  %1829 = vmatpush3.msra.mxu1 %v740_v52  ;;  %v729_v63 = vld [vmem:[%s2278_s21 + $0x18] sm:$0xff]  ;;  %v728_v0 = vld [vmem:[%s2278_s21 + $0x10] sm:$0xff]  ;;  %v727_v1 = vld [vmem:[%s2278_s21 + $0x8] sm:$0xff] }
 0x130   : > { %1644 = vmatprep.subr.mxu0 %v739_v53  ;;  %1814 = vmatprep.subr.mxu1 %v739_v53  ;;  %v726_v2 = vld [vmem:[%s2278_s21] sm:$0xff]  ;;  %v711_v5 = vld [vmem:[%s2271_s25 + $0x8] sm:$0xff]  ;;  %v712_v7 = vld [vmem:[%s2271_s25 + $0x10] sm:$0xff] }
 0x131   : > { %1645 = vmatpush3.msra.mxu0 %v739_v53  ;;  %1830 = vmatpush3.msra.mxu1 %v739_v53  ;;  %v710_v3 = vld [vmem:[%s2271_s25] sm:$0xff]  ;;  %v719_v6 = vld [vmem:[%s2271_s25 + $0x48] sm:$0xff]  ;;  %v720_v8 = vld [vmem:[%s2271_s25 + $0x50] sm:$0xff] }
 0x132   : > { %1646 = vmatprep.subr.mxu0 %v738_v54  ;;  %1815 = vmatprep.subr.mxu1 %v738_v54  ;;  %v718_v4 = vld [vmem:[%s2271_s25 + $0x40] sm:$0xff]  ;;  %v713_v9 = vld [vmem:[%s2271_s25 + $0x18] sm:$0xff]  ;;  %v715_v13 = vld [vmem:[%s2271_s25 + $0x28] sm:$0xff] }
 0x133   : > { %1647 = vmatpush3.msra.mxu0 %v738_v54  ;;  %1831 = vmatpush3.msra.mxu1 %v738_v54  ;;  %v721_v10 = vld [vmem:[%s2271_s25 + $0x58] sm:$0xff]  ;;  %v714_v11 = vld [vmem:[%s2271_s25 + $0x20] sm:$0xff]  ;;  %v723_v14 = vld [vmem:[%s2271_s25 + $0x68] sm:$0xff] }
 0x134   : > { %1648 = vmatprep.subr.mxu0 %v737_v55  ;;  %1816 = vmatprep.subr.mxu1 %v737_v55  ;;  %v722_v12 = vld [vmem:[%s2271_s25 + $0x60] sm:$0xff]  ;;  %v716_v15 = vld [vmem:[%s2271_s25 + $0x30] sm:$0xff]  ;;  %v717_v17 = vld [vmem:[%s2271_s25 + $0x38] sm:$0xff] }
 0x135   : > { %1649 = vmatpush3.msra.mxu0 %v737_v55  ;;  %1832 = vmatpush3.msra.mxu1 %v737_v55  ;;  %v724_v16 = vld [vmem:[%s2271_s25 + $0x70] sm:$0xff]  ;;  %v725_v18 = vld [vmem:[%s2271_s25 + $0x78] sm:$0xff]  ;;  %v695_v19 = vld [vmem:[#allocation2] sm:$0xff] }
 0x136   : > { %1650 = vmatprep.subr.mxu0 %v736_v56  ;;  %1817 = vmatprep.subr.mxu1 %v736_v56  ;;  %v703_v20 = vld [vmem:[#allocation2 + $0x20] sm:$0xff]  ;;  %v694_v23 = vld [vmem:[#allocation2 + $0x30] sm:$0xff]  ;;  %v697_v29 = vld [vmem:[#allocation2 + $0x18] sm:$0xff] }
 0x137   : > { %1651 = vmatpush3.msra.mxu0 %v736_v56  ;;  %1833 = vmatpush3.msra.mxu1 %v736_v56  ;;  %v702_v24 = vld [vmem:[#allocation2 + $0x40] sm:$0xff]  ;;  %v705_v30 = vld [vmem:[#allocation2 + $0x38] sm:$0xff]  ;;  %v704_v36 = vld [vmem:[#allocation2 + $0x10] sm:$0xff] }
 0x138   : > { %1652 = vmatprep.subr.mxu0 %v735_v57  ;;  %1818 = vmatprep.subr.mxu1 %v735_v57  ;;  %v696_v35 = vld [vmem:[#allocation2 + $0x58] sm:$0xff]  ;;  %v699_v41 = vld [vmem:[#allocation2 + $0x68] sm:$0xff]  ;;  %v707_v42 = vld [vmem:[#allocation2 + $0x70] sm:$0xff] }
 0x139   : > { %1653 = vmatpush3.msra.mxu0 %v735_v57  ;;  %1834 = vmatpush3.msra.mxu1 %v735_v57  ;;  %v698_v47 = vld [vmem:[#allocation2 + $0x50] sm:$0xff]  ;;  %v706_v48 = vld [vmem:[#allocation2 + $0x60] sm:$0xff]  ;;  %v701_v53 = vld [vmem:[#allocation2 + $0x48] sm:$0xff] }
 0x13a   : > { %1654 = vmatprep.subr.mxu0 %v734_v58  ;;  %1819 = vmatprep.subr.mxu1 %v734_v58  ;;  %v709_v54 = vld [vmem:[#allocation2 + $0x28] sm:$0xff] }
 0x13b   : > { %1655 = vmatpush3.msra.mxu0 %v734_v58  ;;  %1835 = vmatpush3.msra.mxu1 %v734_v58 }
 0x13c   : > { %1656 = vmatprep.subr.mxu0 %v733_v59  ;;  %1820 = vmatprep.subr.mxu1 %v733_v59 }
 0x13d   : > { %1657 = vmatpush3.msra.mxu0 %v733_v59  ;;  %1836 = vmatpush3.msra.mxu1 %v733_v59  ;;  %v700_v59 = vld [vmem:[#allocation2 + $0x8] sm:$0xff] }
 0x13e   : > { %1658 = vmatprep.subr.mxu0 %v732_v60  ;;  %1821 = vmatprep.subr.mxu1 %v732_v60 }
 0x13f   : > { %1659 = vmatpush3.msra.mxu0 %v732_v60  ;;  %1837 = vmatpush3.msra.mxu1 %v732_v60  ;;  %v708_v60 = vld [vmem:[#allocation2 + $0x78] sm:$0xff] }
 0x140   : > { %1660 = vmatprep.subr.mxu0 %v731_v61  ;;  %1822 = vmatprep.subr.mxu1 %v731_v61 }
 0x141   : > { %1661 = vmatpush3.msra.mxu0 %v731_v61  ;;  %1838 = vmatpush3.msra.mxu1 %v731_v61 }
 0x142   : > { %1662 = vmatprep.subr.mxu0 %v730_v62  ;;  %1823 = vmatprep.subr.mxu1 %v730_v62 }
 0x143   : > { %1663 = vmatpush3.msra.mxu0 %v730_v62  ;;  %1839 = vmatpush3.msra.mxu1 %v730_v62 }
 0x144   : > { %1664 = vmatprep.subr.mxu0 %v729_v63  ;;  %1824 = vmatprep.subr.mxu1 %v729_v63 }
 0x145   : > { %1665 = vmatpush3.msra.mxu0 %v729_v63  ;;  %1840 = vmatpush3.msra.mxu1 %v729_v63 }
 0x146   : > { %1666 = vmatprep.subr.mxu0 %v728_v0  ;;  %1825 = vmatprep.subr.mxu1 %v728_v0 }
 0x147   : > { %1667 = vmatpush3.msra.mxu0 %v728_v0  ;;  %1841 = vmatpush3.msra.mxu1 %v728_v0 }
 0x148   : > { %1668 = vmatprep.subr.mxu0 %v727_v1  ;;  %1826 = vmatprep.subr.mxu1 %v727_v1 }
 0x149   : > { %1669 = vmatpush3.msra.mxu0 %v727_v1  ;;  %1842 = vmatpush3.msra.mxu1 %v727_v1 }
 0x14a   : > { %1670 = vmatprep.subr.mxu0 %v726_v2  ;;  %1827 = vmatprep.subr.mxu1 %v726_v2 }
 0x14b   : > { %1671 = vmatpush3.msra.mxu0 %v726_v2  ;;  %1843 = vmatpush3.msra.mxu1 %v726_v2 }
 0x14c   : > { %1672 = vmatprep.mubr.f32.mxu0 %v710_v3  ;;  %1684 = vmatprep.mubr.f32.mxu1 %v718_v4  ;;  %v955_v3 = vld [vmem:[%s2486_s5 + $0x78] sm:$0xff] (%p919_p1)  ;;  %v954_v4 = vld [vmem:[%s2486_s5 + $0x70] sm:$0xff] (%p919_p1) }
 0x14d   : > { %1673 = vmatmul.mubr.f32.vlgmr.msra.gmra.mxu0 %v711_v5  ;;  %1685 = vmatmul.mubr.f32.vlgmr.msra.gmra.mxu1 %v719_v6  ;;  %v953_v5 = vld [vmem:[%s2486_s5 + $0x68] sm:$0xff] (%p919_p1)  ;;  %v952_v6 = vld [vmem:[%s2486_s5 + $0x60] sm:$0xff] (%p919_p1) }
 0x14e   : > { %1675 = vmatprep.mubr.f32.mxu0 %v712_v7  ;;  %1687 = vmatprep.mubr.f32.mxu1 %v720_v8  ;;  %v951_v8 = vld [vmem:[%s2486_s5 + $0x58] sm:$0xff] (%p919_p1) }
 0x14f   : > { %1696 = vmatprep.subr.mxu0 (%p919_p1), %v955_v3 }
 0x150   : > { %1697 = vmatpush3.msra.mxu0 (%p919_p1), %v955_v3 }
 0x151   : > { %1676 = vmatmul.mubr.f32.gmra.mxu0 %v713_v9  ;;  %1688 = vmatmul.mubr.f32.gmra.mxu1 %v721_v10  ;;  %v950_v9 = vld [vmem:[%s2486_s5 + $0x50] sm:$0xff] (%p919_p1)  ;;  %v949_v10 = vld [vmem:[%s2486_s5 + $0x48] sm:$0xff] (%p919_p1) }
 0x152   : > { %1678 = vmatprep.mubr.f32.mxu0 %v714_v11  ;;  %1690 = vmatprep.mubr.f32.mxu1 %v722_v12  ;;  %v1139_v11 = vld [vmem:[#allocation8 + $0x78] sm:$0xff] (%p919_p1)  ;;  %v1138_v12 = vld [vmem:[#allocation8 + $0x70] sm:$0xff] (%p919_p1) }
 0x153   : > { %1698 = vmatprep.subr.mxu0 (%p919_p1), %v954_v4  ;;  %1752 = vmatprep.subr.mxu1 (%p919_p1), %v1139_v11 }
 0x154   : > { %1699 = vmatpush3.msra.mxu0 (%p919_p1), %v954_v4  ;;  %1753 = vmatpush3.msra.mxu1 (%p919_p1), %v1139_v11 }
 0x155   : > { %1679 = vmatmul.mubr.f32.gmra.mxu0 %v715_v13  ;;  %1691 = vmatmul.mubr.f32.gmra.mxu1 %v723_v14  ;;  %v948_v13 = vld [vmem:[%s2486_s5 + $0x40] sm:$0xff] (%p919_p1)  ;;  %v1137_v14 = vld [vmem:[#allocation8 + $0x68] sm:$0xff] (%p919_p1) }
 0x156   : > { %1681 = vmatprep.mubr.f32.mxu0 %v716_v15  ;;  %1693 = vmatprep.mubr.f32.mxu1 %v724_v16  ;;  %v947_v15 = vld [vmem:[%s2486_s5 + $0x38] sm:$0xff] (%p919_p1)  ;;  %v1136_v16 = vld [vmem:[#allocation8 + $0x60] sm:$0xff] (%p919_p1) }
 0x157   : > { %1700 = vmatprep.subr.mxu0 (%p919_p1), %v953_v5  ;;  %1754 = vmatprep.subr.mxu1 (%p919_p1), %v1138_v12 }
 0x158   : > { %1701 = vmatpush3.msra.mxu0 (%p919_p1), %v953_v5  ;;  %1755 = vmatpush3.msra.mxu1 (%p919_p1), %v1138_v12 }
 0x159   : > { %1682 = vmatmul.mubr.f32.gmra.mxu0 %v717_v17  ;;  %1694 = vmatmul.mubr.f32.gmra.mxu1 %v725_v18  ;;  %v946_v17 = vld [vmem:[%s2486_s5 + $0x30] sm:$0xff] (%p919_p1)  ;;  %v1135_v18 = vld [vmem:[#allocation8 + $0x58] sm:$0xff] (%p919_p1) }
 0x15a   : > { %1702 = vmatprep.subr.mxu0 (%p919_p1), %v952_v6  ;;  %1756 = vmatprep.subr.mxu1 (%p919_p1), %v1137_v14 }
 0x15b   : > { %1703 = vmatpush3.msra.mxu0 (%p919_p1), %v952_v6  ;;  %1757 = vmatpush3.msra.mxu1 (%p919_p1), %v1137_v14 }
 0x15c   : > { %1704 = vmatprep.subr.mxu0 (%p919_p1), %v951_v8  ;;  %1758 = vmatprep.subr.mxu1 (%p919_p1), %v1136_v16 }
 0x15d   : > { %1705 = vmatpush3.msra.mxu0 (%p919_p1), %v951_v8  ;;  %1759 = vmatpush3.msra.mxu1 (%p919_p1), %v1136_v16 }
 0x15e   : > { %1706 = vmatprep.subr.mxu0 (%p919_p1), %v950_v9  ;;  %1760 = vmatprep.subr.mxu1 (%p919_p1), %v1135_v18 }
 0x15f   : > { %1707 = vmatpush3.msra.mxu0 (%p919_p1), %v950_v9  ;;  %1761 = vmatpush3.msra.mxu1 (%p919_p1), %v1135_v18 }
 0x160   : > { %1708 = vmatprep.subr.mxu0 (%p919_p1), %v949_v10 }
 0x161   : > { %1709 = vmatpush3.msra.mxu0 (%p919_p1), %v949_v10 }
 0x162   : > { %1710 = vmatprep.subr.mxu0 (%p919_p1), %v948_v13 }
 0x163   : > { %1711 = vmatpush3.msra.mxu0 (%p919_p1), %v948_v13 }
 0x164   : > { %1712 = vmatprep.subr.mxu0 (%p919_p1), %v947_v15 }
 0x165   : > { %1713 = vmatpush3.msra.mxu0 (%p919_p1), %v947_v15 }
 0x166   : > { %1714 = vmatprep.subr.mxu0 (%p919_p1), %v946_v17 }
 0x167   : > { %1715 = vmatpush3.msra.mxu0 (%p919_p1), %v946_v17 }
 0x20d   : > { %v1674_v21 = vpop.f32.mrf.mxu0  ;;  %v1686_v22 = vpop.f32.mrf.mxu1 }
 0x20e   : > { %v888_v25 = vadd.f32 %v1674_v21, %v695_v19  ;;  %v896_v26 = vadd.f32 %v1686_v22, %v703_v20  ;;  %v945_v19 = vld [vmem:[%s2486_s5 + $0x28] sm:$0xff] (%p919_p1)  ;;  %v1134_v20 = vld [vmem:[#allocation8 + $0x50] sm:$0xff] (%p919_p1)  ;;  %v944_v21 = vld [vmem:[%s2486_s5 + $0x20] sm:$0xff] (%p919_p1) }
 0x20f   : > { %v808_v27 = vpop.f32.mrf.mxu0  ;;  %v848_v28 = vpop.f32.mrf.mxu1  ;;  %v1133_v22 = vld [vmem:[#allocation8 + $0x48] sm:$0xff] (%p919_p1)  ;;  %1716 = vmatprep.subr.mxu0 (%p919_p1), %v945_v19  ;;  %1762 = vmatprep.subr.mxu1 (%p919_p1), %v1134_v20 }
 0x210   : > { %904 = vst [vmem:[#allocation2] sm:$0xff] %v888_v25  ;;  %912 = vst [vmem:[#allocation2 + $0x20] sm:$0xff] %v896_v26  ;;  %v887_v31 = vadd.f32 %v808_v27, %v694_v23  ;;  %v895_v32 = vadd.f32 %v848_v28, %v702_v24  ;;  %1717 = vmatpush3.msra.mxu0 (%p919_p1), %v945_v19  ;;  %v943_v23 = vld [vmem:[%s2486_s5 + $0x18] sm:$0xff] (%p919_p1)  ;;  %1763 = vmatpush3.msra.mxu1 (%p919_p1), %v1134_v20  ;;  %v1132_v24 = vld [vmem:[#allocation8 + $0x40] sm:$0xff] (%p919_p1) }
 0x211   : > { %v1677_v33 = vpop.f32.mrf.mxu0  ;;  %v1689_v34 = vpop.f32.mrf.mxu1  ;;  %1718 = vmatprep.subr.mxu0 (%p919_p1), %v944_v21  ;;  %1764 = vmatprep.subr.mxu1 (%p919_p1), %v1133_v22  ;;  %v942_v25 = vld [vmem:[%s2486_s5 + $0x10] sm:$0xff] (%p919_p1)  ;;  %v1131_v26 = vld [vmem:[#allocation8 + $0x38] sm:$0xff] (%p919_p1)  ;;  %v941_v27 = vld [vmem:[%s2486_s5 + $0x8] sm:$0xff] (%p919_p1) }
 0x212   : > { %903 = vst [vmem:[#allocation2 + $0x30] sm:$0xff] %v887_v31  ;;  %911 = vst [vmem:[#allocation2 + $0x40] sm:$0xff] %v895_v32  ;;  %v890_v37 = vadd.f32 %v1677_v33, %v697_v29  ;;  %v898_v38 = vadd.f32 %v1689_v34, %v705_v30  ;;  %1719 = vmatpush3.msra.mxu0 (%p919_p1), %v944_v21  ;;  %1765 = vmatpush3.msra.mxu1 (%p919_p1), %v1133_v22  ;;  %v1130_v28 = vld [vmem:[#allocation8 + $0x30] sm:$0xff] (%p919_p1)  ;;  %v940_v29 = vld [vmem:[%s2486_s5] sm:$0xff] (%p919_p1) }
 0x213   : > { %v818_v39 = vpop.f32.mrf.mxu0  ;;  %v858_v40 = vpop.f32.mrf.mxu1  ;;  %1720 = vmatprep.subr.mxu0 (%p919_p1), %v943_v23  ;;  %1766 = vmatprep.subr.mxu1 (%p919_p1), %v1132_v24  ;;  %v1129_v30 = vld [vmem:[#allocation8 + $0x28] sm:$0xff] (%p919_p1)  ;;  %v1128_v32 = vld [vmem:[#allocation8 + $0x20] sm:$0xff] (%p919_p1) }
 0x214   : > { %906 = vst [vmem:[#allocation2 + $0x18] sm:$0xff] %v890_v37  ;;  %914 = vst [vmem:[#allocation2 + $0x38] sm:$0xff] %v898_v38  ;;  %v889_v43 = vadd.f32 %v818_v39, %v696_v35  ;;  %v897_v44 = vadd.f32 %v858_v40, %v704_v36  ;;  %1721 = vmatpush3.msra.mxu0 (%p919_p1), %v943_v23  ;;  %1767 = vmatpush3.msra.mxu1 (%p919_p1), %v1132_v24 }
 0x215   : > { %v1680_v45 = vpop.f32.mrf.mxu0  ;;  %v1692_v46 = vpop.f32.mrf.mxu1  ;;  %1722 = vmatprep.subr.mxu0 (%p919_p1), %v942_v25  ;;  %1768 = vmatprep.subr.mxu1 (%p919_p1), %v1131_v26 }
 0x216   : > { %905 = vst [vmem:[#allocation2 + $0x58] sm:$0xff] %v889_v43  ;;  %913 = vst [vmem:[#allocation2 + $0x10] sm:$0xff] %v897_v44  ;;  %v892_v49 = vadd.f32 %v1680_v45, %v699_v41  ;;  %v900_v50 = vadd.f32 %v1692_v46, %v707_v42  ;;  %1723 = vmatpush3.msra.mxu0 (%p919_p1), %v942_v25  ;;  %1769 = vmatpush3.msra.mxu1 (%p919_p1), %v1131_v26 }
 0x217   : > { %v828_v51 = vpop.f32.mrf.mxu0  ;;  %v868_v52 = vpop.f32.mrf.mxu1  ;;  %1724 = vmatprep.subr.mxu0 (%p919_p1), %v941_v27  ;;  %1770 = vmatprep.subr.mxu1 (%p919_p1), %v1130_v28  ;;  %v925_v31 = vld [vmem:[#allocation2] sm:$0xff] (%p919_p1) }
 0x218   : > { %908 = vst [vmem:[#allocation2 + $0x68] sm:$0xff] %v892_v49  ;;  %916 = vst [vmem:[#allocation2 + $0x70] sm:$0xff] %v900_v50  ;;  %v891_v55 = vadd.f32 %v828_v51, %v698_v47  ;;  %v899_v56 = vadd.f32 %v868_v52, %v706_v48  ;;  %1725 = vmatpush3.msra.mxu0 (%p919_p1), %v941_v27  ;;  %1771 = vmatpush3.msra.mxu1 (%p919_p1), %v1130_v28  ;;  %v933_v40 = vld [vmem:[#allocation2 + $0x20] sm:$0xff] (%p919_p1)  ;;  %v1127_v47 = vld [vmem:[#allocation8 + $0x18] sm:$0xff] (%p919_p1) }
 0x219   : > { %v1683_v57 = vpop.f32.mrf.mxu0  ;;  %v1695_v58 = vpop.f32.mrf.mxu1  ;;  %v924_v7 = vld [vmem:[#allocation2 + $0x30] sm:$0xff] (%p919_p1)  ;;  %1726 = vmatprep.subr.mxu0 (%p919_p1), %v940_v29  ;;  %1772 = vmatprep.subr.mxu1 (%p919_p1), %v1129_v30  ;;  %v932_v39 = vld [vmem:[#allocation2 + $0x40] sm:$0xff] (%p919_p1)  ;;  %v1125_v49 = vld [vmem:[#allocation8 + $0x8] sm:$0xff] (%p919_p1) }
 0x21a   : > { %907 = vst [vmem:[#allocation2 + $0x50] sm:$0xff] %v891_v55  ;;  %915 = vst [vmem:[#allocation2 + $0x60] sm:$0xff] %v899_v56  ;;  %v894_v61 = vadd.f32 %v1683_v57, %v701_v53  ;;  %v902_v62 = vadd.f32 %v1695_v58, %v709_v54  ;;  %923 = sbr.rel (!%p919_p1) target bundleno = 967 (0x3c7), region = 76  ;;  %1728 = vmatprep.mubr.f32.mxu0 (%p919_p1), %v924_v7  ;;  %1727 = vmatpush3.msra.mxu0 (%p919_p1), %v940_v29  ;;  %v1126_v48 = vld [vmem:[#allocation8 + $0x10] sm:$0xff] (%p919_p1)  ;;  %v1124_v50 = vld [vmem:[#allocation8] sm:$0xff] (%p919_p1) }
 0x21b   : > { %v838_v63 = vpop.f32.mrf.mxu0  ;;  %v878_v0 = vpop.f32.mrf.mxu1  ;;  %1773 = vmatpush3.msra.mxu1 (%p919_p1), %v1129_v30  ;;  %1729 = vmatmul.mubr.f32.vlgmr.msra.gmra.mxu0 (%p919_p1), %v925_v31  ;;  %v927_v34 = vld [vmem:[#allocation2 + $0x18] sm:$0xff] (%p919_p1)  ;;  %v1488_v51 = vld [vmem:[%s2487_s6] ss:$0 sm:$0xff] (%p919_p1) }
 0x21c   : > { %910 = vst [vmem:[#allocation2 + $0x48] sm:$0xff] %v894_v61  ;;  %918 = vst [vmem:[#allocation2 + $0x28] sm:$0xff] %v902_v62  ;;  %v893_v1 = vadd.f32 %v838_v63, %v700_v59  ;;  %v901_v2 = vadd.f32 %v878_v0, %v708_v60  ;;  %1774 = vmatprep.subr.mxu1 (%p919_p1), %v1128_v32  ;;  %v935_v42 = vld [vmem:[#allocation2 + $0x38] sm:$0xff] (%p919_p1) }
 0x21d   : > { %v926_v33 = vld [vmem:[#allocation2 + $0x58] sm:$0xff] (%p919_p1)  ;;  %1775 = vmatpush3.msra.mxu1 (%p919_p1), %v1128_v32  ;;  %v934_v41 = vld [vmem:[#allocation2 + $0x10] sm:$0xff] (%p919_p1) }
 0x21e   : > { %909 = vst [vmem:[#allocation2 + $0x8] sm:$0xff] %v893_v1  ;;  %917 = vst [vmem:[#allocation2 + $0x78] sm:$0xff] %v901_v2  ;;  %1731 = vmatprep.mubr.f32.mxu0 (%p919_p1), %v926_v33  ;;  %1776 = vmatprep.subr.mxu1 (%p919_p1), %v1127_v47 }
 0x21f   : > { %1732 = vmatmul.mubr.f32.gmra.mxu0 %v927_v34  ;;  %v929_v36 = vld [vmem:[#allocation2 + $0x68] sm:$0xff]  ;;  %v937_v44 = vld [vmem:[#allocation2 + $0x70] sm:$0xff]  ;;  %1777 = vmatpush3.msra.mxu1 %v1127_v47 }
 0x220   : > { %1778 = vmatprep.subr.mxu1 %v1126_v48 }
 0x221   : > { %v928_v35 = vld [vmem:[#allocation2 + $0x50] sm:$0xff]  ;;  %v936_v43 = vld [vmem:[#allocation2 + $0x60] sm:$0xff]  ;;  %1779 = vmatpush3.msra.mxu1 %v1126_v48 }
 0x222   : > { %1734 = vmatprep.mubr.f32.mxu0 %v928_v35  ;;  %1780 = vmatprep.subr.mxu1 %v1125_v49 }
 0x223   : > { %1735 = vmatmul.mubr.f32.gmra.mxu0 %v929_v36  ;;  %v931_v38 = vld [vmem:[#allocation2 + $0x48] sm:$0xff]  ;;  %1781 = vmatpush3.msra.mxu1 %v1125_v49  ;;  %v1489_v36 = vld [vmem:[%s2489_s8] ss:$0 sm:$0xff] }
 0x224   : > { %v939_v46 = vld [vmem:[#allocation2 + $0x28] sm:$0xff]  ;;  %1782 = vmatprep.subr.mxu1 %v1124_v50 }
 0x225   : > { %v930_v37 = vld [vmem:[#allocation2 + $0x8] sm:$0xff]  ;;  %v938_v45 = vld [vmem:[#allocation2 + $0x78] sm:$0xff]  ;;  %1783 = vmatpush3.msra.mxu1 %v1124_v50 }
 0x226   : > { %1737 = vmatprep.mubr.f32.mxu0 %v930_v37 }
 0x227   : > { %1738 = vmatmul.mubr.f32.gmra.mxu0 %v931_v38 }
 0x228   : > { %1740 = vmatprep.mubr.f32.mxu0 %v932_v39 }
 0x22b   : > { %1741 = vmatmul.mubr.f32.gmra.mxu0 %v933_v40 }
 0x22c   : > { %1743 = vmatprep.mubr.f32.mxu0 %v934_v41 }
 0x22f   : > { %1744 = vmatmul.mubr.f32.gmra.mxu0 %v935_v42 }
 0x230   : > { %1746 = vmatprep.mubr.f32.mxu0 %v936_v43 }
 0x233   : > { %1747 = vmatmul.mubr.f32.gmra.mxu0 %v937_v44 }
 0x234   : > { %1749 = vmatprep.mubr.f32.mxu0 %v938_v45 }
 0x237   : > { %1750 = vmatmul.mubr.f32.gmra.mxu0 %v939_v46 }
 0x2db   : > { %v1730_v52 = vpop.f32.mrf.mxu0 }
 0x2dc   : > { %v1035_v53 = vadd.f32 %v1730_v52, %v1488_v51 }
 0x2dd   : > { %v1029_v54 = vpop.f32.mrf.mxu0 }
 0x2de   : > { %v1030_v55 = vadd.f32 %v1488_v51, %v1029_v54  ;;  %v1109_v58 = vmax.f32 %v1035_v53, 0.0 }
 0x2df   : > { %v1733_v56 = vpop.f32.mrf.mxu0 }
 0x2e0   : > { %v1108_v57 = vmax.f32 %v1030_v55, 0.0  ;;  %v1045_v59 = vadd.f32 %v1733_v56, %v1488_v51 }
 0x2e1   : > { %v1039_v60 = vpop.f32.mrf.mxu0 }
 0x2e2   : > { %v1040_v61 = vadd.f32 %v1488_v51, %v1039_v60  ;;  %1784 = vmatprep.mubr.f32.mxu1 %v1108_v57  ;;  %v1111_v0 = vmax.f32 %v1045_v59, 0.0 }
 0x2e3   : > { %v1736_v62 = vpop.f32.mrf.mxu0  ;;  %1785 = vmatmul.mubr.f32.vlgmr.msra.gmra.mxu1 %v1109_v58 }
 0x2e4   : > { %v1110_v63 = vmax.f32 %v1040_v61, 0.0  ;;  %v1055_v1 = vadd.f32 %v1736_v62, %v1488_v51 }
 0x2e5   : > { %v1049_v2 = vpop.f32.mrf.mxu0 }
 0x2e6   : > { %v1050_v3 = vadd.f32 %v1488_v51, %v1049_v2  ;;  %1787 = vmatprep.mubr.f32.mxu1 %v1110_v63  ;;  %v1113_v6 = vmax.f32 %v1055_v1, 0.0 }
 0x2e7   : > { %v1739_v4 = vpop.f32.mrf.mxu0  ;;  %1788 = vmatmul.mubr.f32.gmra.mxu1 %v1111_v0 }
 0x2e8   : > { %v1112_v5 = vmax.f32 %v1050_v3, 0.0  ;;  %v1065_v7 = vadd.f32 %v1739_v4, %v1488_v51 }
 0x2e9   : > { %v1059_v8 = vpop.f32.mrf.mxu0 }
 0x2ea   : > { %v1060_v9 = vadd.f32 %v1488_v51, %v1059_v8  ;;  %1790 = vmatprep.mubr.f32.mxu1 %v1112_v5  ;;  %v1115_v12 = vmax.f32 %v1065_v7, 0.0 }
 0x2eb   : > { %v1742_v10 = vpop.f32.mrf.mxu0  ;;  %1791 = vmatmul.mubr.f32.gmra.mxu1 %v1113_v6 }
 0x2ec   : > { %v1114_v11 = vmax.f32 %v1060_v9, 0.0  ;;  %v1075_v13 = vadd.f32 %v1742_v10, %v1488_v51 }
 0x2ed   : > { %v1069_v14 = vpop.f32.mrf.mxu0 }
 0x2ee   : > { %v1070_v15 = vadd.f32 %v1488_v51, %v1069_v14  ;;  %1793 = vmatprep.mubr.f32.mxu1 %v1114_v11  ;;  %v1117_v18 = vmax.f32 %v1075_v13, 0.0 }
 0x2ef   : > { %v1745_v16 = vpop.f32.mrf.mxu0  ;;  %1794 = vmatmul.mubr.f32.gmra.mxu1 %v1115_v12 }
 0x2f0   : > { %v1116_v17 = vmax.f32 %v1070_v15, 0.0  ;;  %v1085_v19 = vadd.f32 %v1745_v16, %v1488_v51 }
 0x2f1   : > { %v1079_v20 = vpop.f32.mrf.mxu0 }
 0x2f2   : > { %v1080_v21 = vadd.f32 %v1488_v51, %v1079_v20  ;;  %1796 = vmatprep.mubr.f32.mxu1 %v1116_v17  ;;  %v1119_v24 = vmax.f32 %v1085_v19, 0.0 }
 0x2f3   : > { %v1748_v22 = vpop.f32.mrf.mxu0  ;;  %1797 = vmatmul.mubr.f32.gmra.mxu1 %v1117_v18 }
 0x2f4   : > { %v1118_v23 = vmax.f32 %v1080_v21, 0.0  ;;  %v1095_v25 = vadd.f32 %v1748_v22, %v1488_v51 }
 0x2f5   : > { %v1089_v26 = vpop.f32.mrf.mxu0 }
 0x2f6   : > { %v1090_v27 = vadd.f32 %v1488_v51, %v1089_v26  ;;  %1799 = vmatprep.mubr.f32.mxu1 %v1118_v23  ;;  %v1121_v30 = vmax.f32 %v1095_v25, 0.0 }
 0x2f7   : > { %v1751_v28 = vpop.f32.mrf.mxu0  ;;  %1800 = vmatmul.mubr.f32.gmra.mxu1 %v1119_v24 }
 0x2f8   : > { %v1120_v29 = vmax.f32 %v1090_v27, 0.0  ;;  %v1105_v31 = vadd.f32 %v1751_v28, %v1488_v51 }
 0x2f9   : > { %v1099_v32 = vpop.f32.mrf.mxu0 }
 0x2fa   : > { %v1100_v33 = vadd.f32 %v1488_v51, %v1099_v32  ;;  %1802 = vmatprep.mubr.f32.mxu1 %v1120_v29  ;;  %v1123_v35 = vmax.f32 %v1105_v31, 0.0 }
 0x2fb   : > { %1803 = vmatmul.mubr.f32.gmra.mxu1 %v1121_v30 }
 0x2fc   : > { %v1122_v34 = vmax.f32 %v1100_v33, 0.0 }
 0x2fe   : > { %1805 = vmatprep.mubr.f32.mxu1 %v1122_v34 }
 0x2ff   : > { %1806 = vmatmul.mubr.f32.gmra.mxu1 %v1123_v35 }
 0x3a3   : > { %v1786_v37 = vpop.f32.mrf.mxu1 }
 0x3a4   : > { %v1219_v38 = vadd.f32 %v1786_v37, %v1489_v36 }
 0x3a5   : > { %v1213_v39 = vpop.f32.mrf.mxu1 }
 0x3a6   : > { %v1293_v40 = vmax.f32 %v1219_v38, 0.0  ;;  %v1214_v41 = vadd.f32 %v1489_v36, %v1213_v39 }
 0x3a7   : > { %v1789_v42 = vpop.f32.mrf.mxu1 }
 0x3a8   : > { %1309 = vst [vmem:[#allocation9 + $0x8] sm:$0xff] %v1293_v40  ;;  %v1292_v43 = vmax.f32 %v1214_v41, 0.0  ;;  %v1229_v44 = vadd.f32 %v1789_v42, %v1489_v36 }
 0x3a9   : > { %v1223_v45 = vpop.f32.mrf.mxu1 }
 0x3aa   : > { %1308 = vst [vmem:[#allocation9] sm:$0xff] %v1292_v43  ;;  %v1295_v46 = vmax.f32 %v1229_v44, 0.0  ;;  %v1224_v47 = vadd.f32 %v1489_v36, %v1223_v45 }
 0x3ab   : > { %v1792_v48 = vpop.f32.mrf.mxu1 }
 0x3ac   : > { %1311 = vst [vmem:[#allocation9 + $0x18] sm:$0xff] %v1295_v46  ;;  %v1294_v49 = vmax.f32 %v1224_v47, 0.0  ;;  %v1239_v50 = vadd.f32 %v1792_v48, %v1489_v36 }
 0x3ad   : > { %v1233_v51 = vpop.f32.mrf.mxu1 }
 0x3ae   : > { %1310 = vst [vmem:[#allocation9 + $0x10] sm:$0xff] %v1294_v49  ;;  %v1297_v52 = vmax.f32 %v1239_v50, 0.0  ;;  %v1234_v53 = vadd.f32 %v1489_v36, %v1233_v51 }
 0x3af   : > { %v1795_v54 = vpop.f32.mrf.mxu1 }
 0x3b0   : > { %1313 = vst [vmem:[#allocation9 + $0x28] sm:$0xff] %v1297_v52  ;;  %v1296_v55 = vmax.f32 %v1234_v53, 0.0  ;;  %v1249_v56 = vadd.f32 %v1795_v54, %v1489_v36 }
 0x3b1   : > { %v1243_v57 = vpop.f32.mrf.mxu1 }
 0x3b2   : > { %1312 = vst [vmem:[#allocation9 + $0x20] sm:$0xff] %v1296_v55  ;;  %v1299_v58 = vmax.f32 %v1249_v56, 0.0  ;;  %v1244_v59 = vadd.f32 %v1489_v36, %v1243_v57 }
 0x3b3   : > { %v1798_v60 = vpop.f32.mrf.mxu1 }
 0x3b4   : > { %1315 = vst [vmem:[#allocation9 + $0x38] sm:$0xff] %v1299_v58  ;;  %v1298_v61 = vmax.f32 %v1244_v59, 0.0  ;;  %v1259_v62 = vadd.f32 %v1798_v60, %v1489_v36 }
 0x3b5   : > { %v1253_v63 = vpop.f32.mrf.mxu1 }
 0x3b6   : > { %1314 = vst [vmem:[#allocation9 + $0x30] sm:$0xff] %v1298_v61  ;;  %v1301_v0 = vmax.f32 %v1259_v62, 0.0  ;;  %v1254_v1 = vadd.f32 %v1489_v36, %v1253_v63 }
 0x3b7   : > { %v1801_v2 = vpop.f32.mrf.mxu1 }
 0x3b8   : > { %1317 = vst [vmem:[#allocation9 + $0x48] sm:$0xff] %v1301_v0  ;;  %v1300_v3 = vmax.f32 %v1254_v1, 0.0  ;;  %v1269_v4 = vadd.f32 %v1801_v2, %v1489_v36 }
 0x3b9   : > { %v1263_v5 = vpop.f32.mrf.mxu1 }
 0x3ba   : > { %1316 = vst [vmem:[#allocation9 + $0x40] sm:$0xff] %v1300_v3  ;;  %v1303_v6 = vmax.f32 %v1269_v4, 0.0  ;;  %v1264_v7 = vadd.f32 %v1489_v36, %v1263_v5 }
 0x3bb   : > { %v1804_v8 = vpop.f32.mrf.mxu1 }
 0x3bc   : > { %1319 = vst [vmem:[#allocation9 + $0x58] sm:$0xff] %v1303_v6  ;;  %v1302_v9 = vmax.f32 %v1264_v7, 0.0  ;;  %v1279_v10 = vadd.f32 %v1804_v8, %v1489_v36 }
 0x3bd   : > { %v1273_v11 = vpop.f32.mrf.mxu1 }
 0x3be   : > { %1318 = vst [vmem:[#allocation9 + $0x50] sm:$0xff] %v1302_v9  ;;  %v1305_v12 = vmax.f32 %v1279_v10, 0.0  ;;  %v1274_v13 = vadd.f32 %v1489_v36, %v1273_v11 }
 0x3bf   : > { %v1807_v14 = vpop.f32.mrf.mxu1 }
 0x3c0   : > { %1321 = vst [vmem:[#allocation9 + $0x68] sm:$0xff] %v1305_v12  ;;  %v1304_v15 = vmax.f32 %v1274_v13, 0.0  ;;  %v1289_v16 = vadd.f32 %v1807_v14, %v1489_v36 }
 0x3c1   : > { %v1283_v17 = vpop.f32.mrf.mxu1 }
 0x3c2   : > { %1320 = vst [vmem:[#allocation9 + $0x60] sm:$0xff] %v1304_v15  ;;  %v1307_v18 = vmax.f32 %v1289_v16, 0.0  ;;  %v1284_v19 = vadd.f32 %v1489_v36, %v1283_v17 }
 0x3c4   : > { %1323 = vst [vmem:[#allocation9 + $0x78] sm:$0xff] %v1307_v18  ;;  %v1306_v20 = vmax.f32 %v1284_v19, 0.0 }
 0x3c6   : > { %1322 = vst [vmem:[#allocation9 + $0x70] sm:$0xff] %v1306_v20 }
 0x3c7 PF: > { %p1870_p4 = scmp.eq.s32.totalorder %s2183_s15, 1  ;;  %s2101_s16 = smov [#allocation9]  }
 0x3c8   : > { %s1333_s18 = sshll.u32 %s2101_s16, 4  ;;  %s1334_s18 = int_to_ptr.vmem [resolvable:$true] %s1333_s18 }
 0x3c9   : > { %s2008_s25 = scalar_lea.vmem %s1334_s18, 2048  ;;  %p2015_p9 = scmp.lt.s32.totalorder %s1334_s18, %s1334_s18 }
 0x3ca   : > { %p2009_p7 = scmp.ne.s32.totalorder %s1334_s18, %s2008_s25  ;;  %p2016_p10 = scmp.lt.s32.totalorder %s2008_s25, %s2008_s25 }
 0x3cc   : > { %p2010_p12 = pnand %p2009_p7, %p1870_p4  ;;  %p2017_p11 = por %p2016_p10, %p2015_p9 }
 0x3ce   : > { %p2011_p8 = pneg %p2010_p12 }
 0x3d0   : > { %p2018_p13 = pnand %p2017_p11, %p2011_p8 }
 0x3d2   : > { %2021 = shalt.err (!%p2018_p13)
}
 0x3d3   : > { %s2102_s21 = smov 128   ;;  %s2103_s28 = smov 8  }
 0x3d4   : > { %1853 = dma.vmem_to_hbm [thread:$0]  (%p1870_p4), %s1334_s18, 2048, %s2490_s9, [#allocation5], %s2102_s21, %s2102_s21, %s2103_s28  }
 0x3d5   : > { %2069 = dma.done.wait (%p1870_p4), [#allocation5], 2048  }
 0x3d6   : > { %2071 = vsyncadd (%p1870_p4), [#allocation5], 4294965248 }
 0x3d7 PF: > { %s26_s14 = sadd.s32 1, %s2094_s14   ;;  %s2511_s12 = sld [smem:[#allocation14_spill]] }
 0x3d8   : > { %p23_p0 = scmp.ge.s32.totalorder %s26_s14, 4   ;;  %s2512_s13 = sld [smem:[#allocation15_spill]] }
 0x3d9   : > { %s2513_s30 = smov %s2078_s10  ;;  %s2514_s10 = smov %s2082_s11 }
 0x3da   : > { %s2515_s11 = smov %s2232_s20  ;;  %25 = sbr.rel (!%p23_p0) target bundleno = 11 (0xb), region = 122 }
 0x3df   :  { %1349 = vsyncpa [#allocation4], 1 }
 0x3e0   :  { %1351 = vsyncpa [#allocation4 + $0x1], 1 }
 0x3e1   :  { %1352 = vsyncpa [#allocation7], 1 }
 0x3e2   :  { %1354 = vsyncpa [#allocation7 + $0x1], 1 }
 0x3e3   :  { %1355 = vsyncpa [#allocation5], 1 }
 0x3e4   :  { %1357 = vsyncpa [#allocation5 + $0x1], 1 }

</bundles_post_ra>
